<compile_context>
chip_gen: v5e
topology: v5e:2x2
jax: 0.10.0
libtpu: 0.0.40
codegen_flags: <defaults>
</compile_context>

<pallas_src>
import jax
import jax.numpy as jnp
from jax.experimental import pallas as pl
from jax.experimental.pallas import tpu as pltpu

F_IN, H, F_OUT = 3, 2, 1


def mlp_kernel(w1_ref, b1_ref, w2_ref, b2_ref, x_ref, o_ref):
    # x_ref: [3, TILE_B] (lane-dense, batch on lanes); o_ref: [1, TILE_B]
    # w1_ref: SMEM f32[6] = W1[F_in, H] row-major; b1_ref: f32[2]; w2_ref: f32[2]; b2_ref: f32[1]
    x0 = x_ref[0:1, :]
    x1 = x_ref[1:2, :]
    x2 = x_ref[2:3, :]
    # hidden_j = sum_i W1[i, j] * x_i + b1_j   (unrolled VPU FMAs, no MXU)
    h0 = w1_ref[0] * x0 + w1_ref[2] * x1 + w1_ref[4] * x2 + b1_ref[0]
    h1 = w1_ref[1] * x0 + w1_ref[3] * x1 + w1_ref[5] * x2 + b1_ref[1]
    h0 = jnp.maximum(h0, 0.0)
    h1 = jnp.maximum(h1, 0.0)
    # y = W2[0]*h0 + W2[1]*h1 + b2   -> lane-dense [1, TILE_B] store
    o_ref[...] = w2_ref[0] * h0 + w2_ref[1] * h1 + b2_ref[0]


def _round_up(n, m):
    return ((n + m - 1) // m) * m


def mlp_forward(x, w1, b1, w2, b2, *, batch_tile=16384):
    """x: [B, 3] or [3]; w1: [3, 2]; b1: [2]; w2: [2, 1]; b2: [1] -> [B, 1] (or [1])."""
    x = jnp.asarray(x, jnp.float32)
    squeeze = x.ndim == 1
    if squeeze:
        x = x[None, :]
    B, f_in = x.shape
    assert f_in == F_IN, f_in

    # Lane-dense layout: batch on the 128-wide lane axis.
    xT = x.T  # [3, B]
    lane = 128
    tile_b = min(_round_up(batch_tile, lane), _round_up(B, lane))
    b_pad = _round_up(B, tile_b)
    if b_pad != B:
        xT = jnp.pad(xT, ((0, 0), (0, b_pad - B)))
    grid = (b_pad // tile_b,)

    # Flat SMEM parameter arrays (kernel layout, 11 floats total).
    w1f = jnp.asarray(w1, jnp.float32).reshape(-1)  # [6], row-major [F_in, H]
    b1f = jnp.asarray(b1, jnp.float32).reshape(-1)  # [2]
    w2f = jnp.asarray(w2, jnp.float32).reshape(-1)  # [2]
    b2f = jnp.asarray(b2, jnp.float32).reshape(-1)  # [1]

    out_t = pl.pallas_call(
        mlp_kernel,
        out_shape=jax.ShapeDtypeStruct((F_OUT, b_pad), jnp.float32),
        grid=grid,
        in_specs=[
            pl.BlockSpec(memory_space=pltpu.MemorySpace.SMEM),   # w1 (whole array, SMEM)
            pl.BlockSpec(memory_space=pltpu.MemorySpace.SMEM),   # b1
            pl.BlockSpec(memory_space=pltpu.MemorySpace.SMEM),   # w2
            pl.BlockSpec(memory_space=pltpu.MemorySpace.SMEM),   # b2
            pl.BlockSpec((F_IN, tile_b), lambda i: (0, i)),      # xT lane tile
        ],
        out_specs=pl.BlockSpec((F_OUT, tile_b), lambda i: (0, i)),
        compiler_params=pltpu.CompilerParams(
            dimension_semantics=("parallel",),  # v7x: both TensorCores take batch tiles
        ),
        cost_estimate=pl.CostEstimate(
            flops=b_pad * (2 * F_IN * H + 2 * H * F_OUT),
            transcendentals=0,
            bytes_accessed=b_pad * (F_IN + F_OUT) * 4,
        ),
    )(w1f, b1f, w2f, b2f, xT)

    out = out_t[:, :B].T  # [B, 1]
    if squeeze:
        out = out[0]  # [1], matching nn.Linear on a 1-D input
    return out


def init_params(key):
    """PyTorch nn.Linear default init: U(-1/sqrt(fan_in), 1/sqrt(fan_in)), kernel layout."""
    k1, k2, k3, k4 = jax.random.split(key, 4)
    bound1 = 1.0 / jnp.sqrt(float(F_IN))
    bound2 = 1.0 / jnp.sqrt(float(H))
    w1 = jax.random.uniform(k1, (F_IN, H), jnp.float32, -bound1, bound1)   # [3, 2]
    b1 = jax.random.uniform(k2, (H,), jnp.float32, -bound1, bound1)        # [2]
    w2 = jax.random.uniform(k3, (H, F_OUT), jnp.float32, -bound2, bound2)  # [2, 1]
    b2 = jax.random.uniform(k4, (F_OUT,), jnp.float32, -bound2, bound2)    # [1]
    return w1, b1, w2, b2


def _reference(x, w1, b1, w2, b2):
    x2d = x if x.ndim == 2 else x[None, :]
    y = jnp.maximum(x2d @ w1 + b1[None, :], 0.0) @ w2 + b2[None, :]
    return y if x.ndim == 2 else y[0]


if __name__ == "__main__":
    key = jax.random.PRNGKey(0)
    w1, b1, w2, b2 = init_params(key)

    # Module's example input: torch.ones(3) -> single vector path.
    x_vec = jnp.ones((3,), jnp.float32)
    out_vec = jax.block_until_ready(mlp_forward(x_vec, w1, b1, w2, b2))
    assert out_vec.shape == (1,), out_vec.shape
    assert jnp.allclose(out_vec, _reference(x_vec, w1, b1, w2, b2), atol=1e-5, rtol=1e-5)

    # Small batch (pads lanes to 128, grid of 1).
    x_small = jax.random.normal(jax.random.PRNGKey(1), (8, 3), jnp.float32)
    out_small = jax.block_until_ready(mlp_forward(x_small, w1, b1, w2, b2))
    assert out_small.shape == (8, 1), out_small.shape
    assert jnp.allclose(out_small, _reference(x_small, w1, b1, w2, b2), atol=1e-5, rtol=1e-5)

    # Non-128-divisible batch exercising the padded lane-dense grid path with a small tile.
    x_big = jax.random.normal(jax.random.PRNGKey(2), (1000, 3), jnp.float32)
    out_big = jax.block_until_ready(mlp_forward(x_big, w1, b1, w2, b2, batch_tile=256))
    assert out_big.shape == (1000, 1), out_big.shape
    assert jnp.allclose(out_big, _reference(x_big, w1, b1, w2, b2), atol=1e-5, rtol=1e-5)

    print("KERNEL_OK")
</pallas_src>

<mosaic_0001>
module attributes {stable_mosaic.version = 11 : i64} {
  func.func @mlp_kernel(%arg0: i32, %arg1: memref<6xf32, #tpu.memory_space<smem>>, %arg2: memref<2xf32, #tpu.memory_space<smem>>, %arg3: memref<2xf32, #tpu.memory_space<smem>>, %arg4: memref<1xf32, #tpu.memory_space<smem>>, %arg5: memref<3x128xf32, #tpu.memory_space<vmem>>, %arg6: memref<1x128xf32, #tpu.memory_space<vmem>>) attributes {dimension_semantics = [#tpu.dimension_semantics<parallel>], iteration_bounds = array<i64: 1>, scalar_prefetch = 0 : i64, scratch_operands = 0 : i64, tpu.core_type = #tpu.core_type<tc>, window_params = [{transform_indices = @transform_0, window_bounds = array<i64: 6>}, {transform_indices = @transform_1, window_bounds = array<i64: 2>}, {transform_indices = @transform_2, window_bounds = array<i64: 2>}, {transform_indices = @transform_3, window_bounds = array<i64: 1>}, {transform_indices = @transform_4, window_bounds = array<i64: 3, 128>}, {transform_indices = @transform_5, window_bounds = array<i64: 1, 128>}]} {
    %c0 = arith.constant 0 : index
    %c0_0 = arith.constant 0 : index
    %0 = vector.load %arg5[%c0, %c0_0] : memref<3x128xf32, #tpu.memory_space<vmem>>, vector<1x128xf32>
    %c1 = arith.constant 1 : index
    %c0_1 = arith.constant 0 : index
    %1 = vector.load %arg5[%c1, %c0_1] : memref<3x128xf32, #tpu.memory_space<vmem>>, vector<1x128xf32>
    %c2 = arith.constant 2 : index
    %c0_2 = arith.constant 0 : index
    %2 = vector.load %arg5[%c2, %c0_2] : memref<3x128xf32, #tpu.memory_space<vmem>>, vector<1x128xf32>
    %c0_3 = arith.constant 0 : index
    %3 = memref.load %arg1[%c0_3] : memref<6xf32, #tpu.memory_space<smem>>
    %4 = vector.broadcast %3 : f32 to vector<1x128xf32>
    %5 = arith.mulf %4, %0 : vector<1x128xf32>
    %c2_4 = arith.constant 2 : index
    %6 = memref.load %arg1[%c2_4] : memref<6xf32, #tpu.memory_space<smem>>
    %7 = vector.broadcast %6 : f32 to vector<1x128xf32>
    %8 = arith.mulf %7, %1 : vector<1x128xf32>
    %9 = arith.addf %5, %8 : vector<1x128xf32>
    %c4 = arith.constant 4 : index
    %10 = memref.load %arg1[%c4] : memref<6xf32, #tpu.memory_space<smem>>
    %11 = vector.broadcast %10 : f32 to vector<1x128xf32>
    %12 = arith.mulf %11, %2 : vector<1x128xf32>
    %13 = arith.addf %9, %12 : vector<1x128xf32>
    %c0_5 = arith.constant 0 : index
    %14 = memref.load %arg2[%c0_5] : memref<2xf32, #tpu.memory_space<smem>>
    %15 = vector.broadcast %14 : f32 to vector<1x128xf32>
    %16 = arith.addf %13, %15 : vector<1x128xf32>
    %c1_6 = arith.constant 1 : index
    %17 = memref.load %arg1[%c1_6] : memref<6xf32, #tpu.memory_space<smem>>
    %18 = vector.broadcast %17 : f32 to vector<1x128xf32>
    %19 = arith.mulf %18, %0 : vector<1x128xf32>
    %c3 = arith.constant 3 : index
    %20 = memref.load %arg1[%c3] : memref<6xf32, #tpu.memory_space<smem>>
    %21 = vector.broadcast %20 : f32 to vector<1x128xf32>
    %22 = arith.mulf %21, %1 : vector<1x128xf32>
    %23 = arith.addf %19, %22 : vector<1x128xf32>
    %c5 = arith.constant 5 : index
    %24 = memref.load %arg1[%c5] : memref<6xf32, #tpu.memory_space<smem>>
    %25 = vector.broadcast %24 : f32 to vector<1x128xf32>
    %26 = arith.mulf %25, %2 : vector<1x128xf32>
    %27 = arith.addf %23, %26 : vector<1x128xf32>
    %c1_7 = arith.constant 1 : index
    %28 = memref.load %arg2[%c1_7] : memref<2xf32, #tpu.memory_space<smem>>
    %29 = vector.broadcast %28 : f32 to vector<1x128xf32>
    %30 = arith.addf %27, %29 : vector<1x128xf32>
    %cst = arith.constant 0.000000e+00 : f32
    %31 = vector.broadcast %cst : f32 to vector<1x128xf32>
    %32 = arith.maximumf %16, %31 : vector<1x128xf32>
    %cst_8 = arith.constant 0.000000e+00 : f32
    %33 = vector.broadcast %cst_8 : f32 to vector<1x128xf32>
    %34 = arith.maximumf %30, %33 : vector<1x128xf32>
    %c0_9 = arith.constant 0 : index
    %35 = memref.load %arg3[%c0_9] : memref<2xf32, #tpu.memory_space<smem>>
    %36 = vector.broadcast %35 : f32 to vector<1x128xf32>
    %37 = arith.mulf %36, %32 : vector<1x128xf32>
    %c1_10 = arith.constant 1 : index
    %38 = memref.load %arg3[%c1_10] : memref<2xf32, #tpu.memory_space<smem>>
    %39 = vector.broadcast %38 : f32 to vector<1x128xf32>
    %40 = arith.mulf %39, %34 : vector<1x128xf32>
    %41 = arith.addf %37, %40 : vector<1x128xf32>
    %c0_11 = arith.constant 0 : index
    %42 = memref.load %arg4[%c0_11] : memref<1xf32, #tpu.memory_space<smem>>
    %43 = vector.broadcast %42 : f32 to vector<1x128xf32>
    %44 = arith.addf %41, %43 : vector<1x128xf32>
    %c0_12 = arith.constant 0 : index
    %c0_13 = arith.constant 0 : index
    %45 = vector.load %arg6[%c0_12, %c0_13] : memref<1x128xf32, #tpu.memory_space<vmem>>, vector<1x128xf32>
    tpu.vector_store %arg6[%c0_12, %c0_13], %44 {strides = array<i32>} : memref<1x128xf32, #tpu.memory_space<vmem>>, vector<1x128xf32>,
    return
  }
  func.func @transform_0(%arg0: i32) -> i32 {
    %c0_i32 = arith.constant 0 : i32
    %c0_i32_0 = arith.constant 0 : i32
    return %c0_i32 : i32
  }
  func.func @transform_1(%arg0: i32) -> i32 {
    %c0_i32 = arith.constant 0 : i32
    %c0_i32_0 = arith.constant 0 : i32
    return %c0_i32 : i32
  }
  func.func @transform_2(%arg0: i32) -> i32 {
    %c0_i32 = arith.constant 0 : i32
    %c0_i32_0 = arith.constant 0 : i32
    return %c0_i32 : i32
  }
  func.func @transform_3(%arg0: i32) -> i32 {
    %c0_i32 = arith.constant 0 : i32
    %c0_i32_0 = arith.constant 0 : i32
    return %c0_i32 : i32
  }
  func.func @transform_4(%arg0: i32) -> (i32, i32) {
    %c0_i32 = arith.constant 0 : i32
    %c0_i32_0 = arith.constant 0 : i32
    return %c0_i32, %arg0 : i32, i32
  }
  func.func @transform_5(%arg0: i32) -> (i32, i32) {
    %c0_i32 = arith.constant 0 : i32
    %c0_i32_0 = arith.constant 0 : i32
    return %c0_i32, %arg0 : i32, i32
  }
}

</mosaic_0001>

<bundles_post_ra>
// kernel: tpu_custom_call.1
= control target key start
LH: loop header
LB: loop body
LE: loop exit
PB: predicated region body
PF: predicated region fallthrough
CT: control target
= control target key end

     0   :  { %11 = vsyncpa [#allocation5], 0  ;;  %s255_s0 = inlined_call_operand.hbm [shape: f32[6], index: 0, kind: input, shape index: {}]   ;;  %s256_s1 = inlined_call_operand.hbm [shape: f32[2], index: 1, kind: input, shape index: {}]   ;;  %s257_s2 = inlined_call_operand.hbm [shape: f32[2], index: 2, kind: input, shape index: {}]   ;;  %s258_s3 = inlined_call_operand.<no memory space> [shape: f32[1], index: 3, kind: input, shape index: {}]   ;;  %s259_s4 = inlined_call_operand.vmem [shape: f32[3,128], index: 4, kind: input, shape index: {}]   ;;  %s260_s5 = inlined_call_operand.hbm [shape: f32[1,128], index: 5, kind: output, shape index: {}]  }
   0x1   :  { %12 = vsyncpa [#allocation7], 0  ;;  %s28_s20 = sshll.u32 %s256_s1, 4  ;;  %s29_s20 = int_to_ptr.hbm [resolvable:$true] %s28_s20 }
   0x2   :  { %13 = vsyncpa [#allocation4], 0  ;;  %s19_s23 = sshll.u32 %s255_s0, 4  ;;  %s197_s24 = smov [#allocation6]   ;;  %s20_s23 = int_to_ptr.hbm [resolvable:$true] %s19_s23 }
   0x3   :  { %31 = dma.hbm_to_smem %s29_s20, 16, %s197_s24, [#allocation7]  }
   0x4   :  { %s198_s25 = smov [#allocation3]   ;;  %s37_s28 = sshll.u32 %s257_s2, 4  ;;  %s38_s28 = int_to_ptr.hbm [resolvable:$true] %s37_s28 }
   0x5   :  { %22 = dma.hbm_to_smem %s20_s23, 16, %s198_s25, [#allocation5]  }
   0x6   :  { %s199_s29 = smov [#allocation8]  }
   0x7   :  { %40 = dma.hbm_to_smem %s38_s28, 16, %s199_s29, [#allocation7]  }
   0x8   :  { %191 = dma.done.wait [#allocation5], 16  }
   0x9   :  { %192 = vsyncadd [#allocation5], 4294967280 }
   0xa   :  { %193 = dma.done.wait [#allocation7], 32  }
   0xb   :  { %194 = vsyncadd [#allocation7], 4294967264 }
   0xc   :  { %57 = sfence }
   0xd   :  { %s61_s1 = sld [smem:[#allocation3]]  ;;  %v58_v0 = vld [vmem:[%s259_s4] sm:$0x1]  ;;  %v59_v1 = vld [vmem:[%s259_s4 + $0x1] sm:$0x1]  ;;  %v99_v29 = vstv %s258_s3  ;;  %s200_s19 = smov [#allocation9]  }
   0xe   :  { %s120_s30 = sld [smem:[#allocation3 + $0x2]]  ;;  %v60_v2 = vld [vmem:[%s259_s4 + $0x2] sm:$0x1]  ;;  %s107_s20 = sshll.u32 %s200_s19, 4  ;;  %s108_s20 = int_to_ptr.vmem [resolvable:$true] %s107_s20 }
   0xf   :  { %s121_s0 = sld [smem:[#allocation3 + $0x4]]  ;;  %s109_s23 = sshll.u32 %s260_s5, 4  ;;  %s110_s23 = int_to_ptr.hbm [resolvable:$true] %s109_s23 }
  0x10   :  { %s72_s6 = sld [smem:[#allocation6]] }
  0x11   :  { %s122_s9 = sld [smem:[#allocation3 + $0x1]] }
  0x12   :  { %s123_s2 = sld [smem:[#allocation3 + $0x3]] }
  0x13   :  { %v62_v3 = vstv %s61_s1  ;;  %s124_s14 = sld [smem:[#allocation3 + $0x5]] }
  0x14   :  { %v63_v4 = vmul.f32 %v62_v3, %v58_v0  ;;  %v65_v5 = vstv %s120_s30  ;;  %s125_s15 = sld [smem:[#allocation6 + $0x1]] }
  0x15   :  { %v66_v6 = vmul.f32 %v65_v5, %v59_v1  ;;  %v69_v7 = vstv %s121_s0  ;;  %s91_s16 = sld [smem:[#allocation8]] }
  0x16   :  { %v70_v8 = vmul.f32 %v69_v7, %v60_v2  ;;  %v73_v11 = vstv %s72_s6  ;;  %s126_s17 = sld [smem:[#allocation8 + $0x1]] }
  0x17   :  { %v67_v9 = vadd.f32 %v66_v6, %v63_v4  ;;  %v76_v10 = vstv %s122_s9 }
  0x18   :  { %v77_v12 = vmul.f32 %v76_v10, %v58_v0  ;;  %v79_v13 = vstv %s123_s2 }
  0x19   :  { %v71_v14 = vadd.f32 %v70_v8, %v67_v9  ;;  %v80_v15 = vmul.f32 %v79_v13, %v59_v1  ;;  %v83_v16 = vstv %s124_s14 }
  0x1a   :  { %v84_v17 = vmul.f32 %v83_v16, %v60_v2  ;;  %v87_v20 = vstv %s125_s15 }
  0x1b   :  { %v74_v18 = vadd.f32 %v73_v11, %v71_v14  ;;  %v81_v19 = vadd.f32 %v80_v15, %v77_v12  ;;  %v92_v23 = vstv %s91_s16 }
  0x1c   :  { %v95_v25 = vstv %s126_s17 }
  0x1d   :  { %v85_v21 = vadd.f32 %v84_v17, %v81_v19  ;;  %v89_v22 = vmax.f32 %v74_v18, 0.0 }
  0x1f   :  { %v88_v24 = vadd.f32 %v87_v20, %v85_v21  ;;  %v93_v27 = vmul.f32 %v92_v23, %v89_v22 }
  0x21   :  { %v90_v26 = vmax.f32 %v88_v24, 0.0 }
  0x23   :  { %v96_v28 = vmul.f32 %v95_v25, %v90_v26 }
  0x25   :  { %v97_v30 = vadd.f32 %v96_v28, %v93_v27 }
  0x27   :  { %v100_v31 = vadd.f32 %v99_v29, %v97_v30 }
  0x29   :  { %101 = vst [vmem:[#allocation9] sm:$0x1] %v100_v31 }
  0x2a   :  { %112 = dma.vmem_to_hbm [thread:$0]  %s108_s20, 16, %s110_s23, [#allocation4]  }
  0x2b   :  { %195 = dma.done.wait [#allocation4], 16  }
  0x2c   :  { %196 = vsyncadd [#allocation4], 4294967280 }
  0x2d   :  { %117 = vsyncpa [#allocation4], 1 }
  0x2e   :  { %118 = vsyncpa [#allocation5], 1 }
  0x2f   :  { %119 = vsyncpa [#allocation7], 1 }

</bundles_post_ra>
